<compile_context>
chip_gen: v7x
topology: tpu7x:2x2x1
jax: 0.10.0
libtpu: 0.0.40
codegen_flags: <defaults>
</compile_context>

<pallas_src>
import jax
import jax.numpy as jnp
from jax.experimental import pallas as pl
from jax.experimental.pallas import tpu as pltpu


def _round_up(a, b):
    return (a + b - 1) // b * b


def _cdiv(a, b):
    return (a + b - 1) // b


def _choose_tiles(R, HW, dtype_bytes, target_tile_bytes,
                  max_lane_tile=2048, max_row_tile=4096):
    """Pick (TR, TCL): sublane/lane tile sizes for the (R, HW) view of x."""
    # ----- lane (last-dim) tile -----
    if HW <= max_lane_tile:
        TCL = HW                                   # full extent: always legal
    else:
        HW128 = _round_up(HW, 128)
        # largest multiple of 128 <= max_lane_tile that divides the rounded HW
        best = 0
        for k in range(max_lane_tile // 128, 0, -1):
            c = 128 * k
            if HW128 % c == 0:
                best = c
                break
        if best >= 512:
            TCL = best
        else:
            # no useful divisor: even out the column blocks; last one is masked
            nc_t = _cdiv(HW128, max_lane_tile)
            TCL = _round_up(_cdiv(HW128, nc_t), 128)

    # ----- sublane (row) tile: ~target_tile_bytes per x tile -----
    R8 = _round_up(R, 8)
    tr_target = max(8, (target_tile_bytes // (TCL * dtype_bytes)) // 8 * 8)
    tr_target = min(tr_target, max_row_tile, R8)
    nr_t = _cdiv(R8, tr_target)
    TR = _round_up(_cdiv(R8, nr_t), 8)             # evens row blocks, no tiny tail

    # ----- make sure small problems still produce a multi-step grid (v7x) ----
    nr, nc = _cdiv(R, TR), _cdiv(HW, TCL)
    if nr == 1 and R8 >= 16:
        TR = _round_up(_cdiv(R8, 2), 8)            # split rows across the 2 TCs
        nr = _cdiv(R, TR)
    if nr * nc == 1 and HW >= 256:
        TCL = max(128, (TCL // 2) // 128 * 128)    # otherwise split columns
    return TR, TCL


def _dysig_kernel(x_ref, p_ref, o_ref):
    # x_ref / o_ref : (TR, TCL) tiles of the (R, HW)-flattened activation.
    # p_ref         : (TR, 3) f32 per-row params [0.5*weight, beta, 0.5*alpha].
    p = p_ref[...]
    w = p[:, 0:1]
    b = p[:, 1:2]
    a = p[:, 2:3]
    xf = x_ref[...].astype(jnp.float32)
    # weight*(sigmoid(alpha*x)-0.5)+beta == (0.5*weight)*tanh(0.5*alpha*x)+beta
    o_ref[...] = (w * jnp.tanh(a * xf) + b).astype(o_ref.dtype)


def dysig(x, alpha, weight, beta, *, target_tile_bytes=4 * 1024 * 1024):
    """x: (N, C, H, W); alpha: (1,); weight, beta: (1, C, 1, 1)."""
    N, C, H, W = x.shape
    R, HW = N * C, H * W
    dtype = x.dtype
    dtype_bytes = jnp.dtype(dtype).itemsize

    TR, TCL = _choose_tiles(R, HW, dtype_bytes, target_tile_bytes)
    nr, nc = _cdiv(R, TR), _cdiv(HW, TCL)

    # Tiny per-row parameter pack (f32 regardless of x dtype): negligible HBM.
    w_half = jnp.broadcast_to((0.5 * weight).reshape(1, C), (N, C)).reshape(R)
    b_row = jnp.broadcast_to(beta.reshape(1, C), (N, C)).reshape(R)
    a_half = jnp.broadcast_to((0.5 * alpha).reshape(1, 1), (N, C)).reshape(R)
    params = jnp.stack([w_half, b_row, a_half], axis=-1).astype(jnp.float32)

    x2 = x.reshape(R, HW)  # free relayout for contiguous NCHW

    out2 = pl.pallas_call(
        _dysig_kernel,
        out_shape=jax.ShapeDtypeStruct((R, HW), dtype),
        grid_spec=pltpu.PrefetchScalarGridSpec(
            num_scalar_prefetch=0,
            grid=(nr, nc),                                        # cols innermost
            in_specs=[
                pl.BlockSpec((TR, TCL), lambda i, j: (i, j)),     # x tile
                pl.BlockSpec((TR, 3), lambda i, j: (i, 0)),       # packed params
            ],
            out_specs=pl.BlockSpec((TR, TCL), lambda i, j: (i, j)),
        ),
        compiler_params=pltpu.CompilerParams(
            dimension_semantics=("parallel", "parallel"),
            # ~4 tiles * 4 MiB + params << 32 MiB; explicit so v5e's 16 MiB
            # default scoped limit is not a constraint, and 32 MiB is within
            # every generation's physical VMEM (v7x: 64 MiB/TC).
            vmem_limit_bytes=32 * 1024 * 1024,
        ),
    )(x2, params)

    return out2.reshape(N, C, H, W)


if __name__ == "__main__":
    key = jax.random.PRNGKey(0)
    N, C, H, W = 2, 4, 16, 16

    x = jax.random.normal(key, (N, C, H, W), dtype=jnp.float32)

    # deterministic parameter init matching DySig.__init__
    alpha = jnp.ones((1,), dtype=jnp.float32) * 0.35
    weight = jnp.ones((1, C, 1, 1), dtype=jnp.float32) * 2.0
    beta = jnp.zeros((1, C, 1, 1), dtype=jnp.float32)

    out = dysig(x, alpha, weight, beta)
    out = jax.block_until_ready(out)

    # reference check in plain JAX (original sigmoid formulation)
    ref = weight * (jax.nn.sigmoid(alpha.reshape(()) * x) - 0.5) + beta
    assert out.shape == (N, C, H, W)
    assert out.dtype == x.dtype
    assert jnp.allclose(out, ref, atol=1e-5, rtol=1e-5)

    print("KERNEL_OK")
</pallas_src>

<mosaic_0001>
module attributes {stable_mosaic.version = 11 : i64} {
  func.func @_dysig_kernel(%arg0: i32, %arg1: i32, %arg2: memref<8x128xf32, #tpu.memory_space<vmem>>, %arg3: memref<8x3xf32, #tpu.memory_space<vmem>>, %arg4: memref<8x128xf32, #tpu.memory_space<vmem>>) attributes {dimension_semantics = [#tpu.dimension_semantics<parallel>, #tpu.dimension_semantics<parallel>], iteration_bounds = array<i64: 1, 2>, scalar_prefetch = 0 : i64, scratch_operands = 0 : i64, tpu.core_type = #tpu.core_type<tc>, window_params = [{transform_indices = @transform_0, window_bounds = array<i64: 8, 128>}, {transform_indices = @transform_1, window_bounds = array<i64: 8, 3>}, {transform_indices = @transform_2, window_bounds = array<i64: 8, 128>}]} {
    %c0 = arith.constant 0 : index
    %c0_0 = arith.constant 0 : index
    %0 = vector.load %arg3[%c0, %c0_0] : memref<8x3xf32, #tpu.memory_space<vmem>>, vector<8x3xf32>
    %1 = vector.extract_strided_slice %0 {offsets = [0, 0], sizes = [8, 1], strides = [1, 1]} : vector<8x3xf32> to vector<8x1xf32>
    %2 = vector.extract_strided_slice %0 {offsets = [0, 1], sizes = [8, 1], strides = [1, 1]} : vector<8x3xf32> to vector<8x1xf32>
    %3 = vector.extract_strided_slice %0 {offsets = [0, 2], sizes = [8, 1], strides = [1, 1]} : vector<8x3xf32> to vector<8x1xf32>
    %c0_1 = arith.constant 0 : index
    %c0_2 = arith.constant 0 : index
    %4 = vector.load %arg2[%c0_1, %c0_2] : memref<8x128xf32, #tpu.memory_space<vmem>>, vector<8x128xf32>
    %5 = vector.broadcast %3 : vector<8x1xf32> to vector<8x128xf32>
    %6 = arith.mulf %5, %4 : vector<8x128xf32>
    %7 = math.tanh %6 : vector<8x128xf32>
    %8 = vector.broadcast %1 : vector<8x1xf32> to vector<8x128xf32>
    %9 = arith.mulf %8, %7 : vector<8x128xf32>
    %10 = vector.broadcast %2 : vector<8x1xf32> to vector<8x128xf32>
    %11 = arith.addf %9, %10 : vector<8x128xf32>
    %c0_3 = arith.constant 0 : index
    %c0_4 = arith.constant 0 : index
    %12 = vector.load %arg4[%c0_3, %c0_4] : memref<8x128xf32, #tpu.memory_space<vmem>>, vector<8x128xf32>
    tpu.vector_store %arg4[%c0_3, %c0_4], %11 {strides = array<i32>} : memref<8x128xf32, #tpu.memory_space<vmem>>, vector<8x128xf32>,
    return
  }
  func.func @transform_0(%arg0: i32, %arg1: i32) -> (i32, i32) {
    %c0_i32 = arith.constant 0 : i32
    return %arg0, %arg1 : i32, i32
  }
  func.func @transform_1(%arg0: i32, %arg1: i32) -> (i32, i32) {
    %c0_i32 = arith.constant 0 : i32
    %c0_i32_0 = arith.constant 0 : i32
    return %arg0, %c0_i32 : i32, i32
  }
  func.func @transform_2(%arg0: i32, %arg1: i32) -> (i32, i32) {
    %c0_i32 = arith.constant 0 : i32
    return %arg0, %arg1 : i32, i32
  }
}

</mosaic_0001>

<bundles_post_ra>
// kernel: tpu_custom_call.1
= control target key start
LH: loop header
LB: loop body
LE: loop exit
PB: predicated region body
PF: predicated region fallthrough
CT: control target
= control target key end

     0   :  { %7 = vsyncpa [#allocation3], 0  ;;  %s721_s0 = inlined_call_operand.hbm [shape: f32[8,256], index: 0, kind: input, shape index: {}]   ;;  %s722_s1 = inlined_call_operand.vmem [shape: f32[8,3], index: 1, kind: input, shape index: {}]   ;;  %s723_s2 = inlined_call_operand.hbm [shape: f32[8,256], index: 2, kind: output, shape index: {}]  }
   0x1   :  { %9 = vsyncpa [#allocation3 + $0x1], 0 }
   0x2   :  { %10 = vsyncpa [#allocation4], 0 }
   0x3   :  { %12 = vsyncpa [#allocation4 + $0x1], 0  ;;  %s546_s9 = smov 0   ;;  %s548_s10 = smov 0  }
   0x4   :  { %s550_s11 = smov 0   ;;  %s552_s12 = smov 0  }
   0x5   :  { %s554_s13 = smov 0   ;;  %s556_s14 = smov 0  }
   0x6 LB: > { %s327_s15 = sadd.s32 4294967295, %s524_s14   ;;  %s328_s16 = sadd.s32 4294967294, %s524_s14   ;;  %s524_s14 = sphi %s556_s14, %s18_s14   ;;  %s520_s13 = sphi %s554_s13, %s739_s13   ;;  %s516_s12 = sphi %s552_s12, %s738_s12   ;;  %s512_s11 = sphi %s550_s11, %s737_s11   ;;  %s508_s10 = sphi %s548_s10, %s736_s10   ;;  %s504_s9 = sphi %s546_s9, %s735_s9  }
   0x7   : > { %s27_s17 = sadd.s32 1, %s520_s13  ;;  %s39_s18 = sadd.s32 1, %s512_s11 }
   0x8   : > { %p28_p0 = scmp.ge.s32.totalorder %s27_s17, 2  ;;  %p46_p1 = scmp.ne.s32.totalorder %s512_s11, %s508_s10 }
   0x9   : > { %p47_p2 = scmp.eq.s32.totalorder %s524_s14, 0  ;;  %p52_p3 = scmp.ne.s32.totalorder %s508_s10, %s504_s9 }
   0xa   : > { %s741_s17 = smov (%p28_p0, %s27_s17), 0  ;;  %p53_p5 = scmp.eq.s32.totalorder %s327_s15, 0 }
   0xb   : > { %p587_p4 = por %p47_p2, %p46_p1  ;;  %s35_s20 = ssub.s32 %s520_s13, %s741_s17 }
   0xc   : > { %p104_p6 = scmp.eq.s32.totalorder %s327_s15, 1  ;;  %p37_p7 = scmp.eq.s32.totalorder %s35_s20, 0 }
   0xd   : > { %p593_p8 = por %p53_p5, %p52_p3  ;;  %p110_p10 = scmp.eq.s32.totalorder %s328_s16, 1 }
   0xe   : > { %p597_p9 = por %p104_p6, %p46_p1  ;;  %p353_p13 = scmp.lt.s32.totalorder %s524_s14, 2 }
   0xf   : > { %s602_s23 = scalar_select %p37_p7, %s512_s11, %s39_s18  }
  0x10   : > { %s727_s22 = scalar_select %p597_p9, 1, 0 }
  0x11   : > { %p604_p11 = por %p110_p10, %p52_p3  ;;  %s137_s25 = sand.u32 1, %s512_s11  }
  0x12   : > { %s332_s26 = sshll.u32 %s137_s25, 3  ;;  %s333_s27 = sshll.u32 %s520_s13, 7 }
  0x13   : > { %s728_s24 = scalar_select %p604_p11, 1, 0 }
  0x14   : > { %s615_s30 = scalar_lea.hbm %s721_s0, %s333_s27  ;;  %s141_s3 = scalar_lea.vmem [#allocation2], %s332_s26 }
  0x15   : > { %s150_s4 = sshll.u32 %s141_s3, 4  ;;  %p621_p0 = pnand %p353_p13, %p587_p4  ;;  %s617_s4 = int_to_ptr.vmem [resolvable:$true] %s150_s4 }
  0x16   : > { %s138_s6 = scalar_lea.sflag [#allocation3], %s137_s25  ;;  %s412_s7 = scalar_lea.hbm %s615_s30, 128 }
  0x17   : > { %p413_p3 = scmp.ne.s32.totalorder %s615_s30, %s412_s7  ;;  %p414_p5 = pneg %p621_p0 }
  0x18   : > { %s417_s16 = scalar_lea.hbm %s721_s0, 256  ;;  %p418_p4 = scmp.lt.u32.totalorder %s615_s30, %s721_s0 }
  0x19   : > { %p415_p6 = pnand %p414_p5, %p413_p3  ;;  %p419_p10 = scmp.lt.u32.totalorder %s417_s16, %s412_s7 }
  0x1a   : > { %p421_p12 = scmp.lt.u32.totalorder %s412_s7, %s615_s30 }
  0x1b   : > { %p416_p7 = pneg %p415_p6  ;;  %p420_p13 = por %p419_p10, %p418_p4 }
  0x1d   : > { %p422_p1 = por %p421_p12, %p420_p13 }
  0x1f   : > { %p423_p2 = pnand %p422_p1, %p416_p7 }
  0x21   : > { %426 = shalt.err (!%p423_p2)
}
  0x22   : > { %s427_s20 = scalar_lea.vmem %s617_s4, 128  ;;  %s526_s25 = smov [#allocation2]  }
  0x23   : > { %p428_p3 = scmp.ne.s32.totalorder %s617_s4, %s427_s20  ;;  %s432_s26 = sshll.u32 %s526_s25, 4  ;;  %s433_s26 = int_to_ptr.vmem [resolvable:$false] %s432_s26 }
  0x24   : > { %s434_s27 = scalar_lea.vmem %s433_s26, 256  ;;  %p435_p9 = scmp.lt.s32.totalorder %s617_s4, %s433_s26 }
  0x25   : > { %p430_p6 = pnand %p428_p3, %p414_p5  ;;  %p436_p4 = scmp.lt.s32.totalorder %s434_s27, %s427_s20 }
  0x27   : > { %p431_p11 = pneg %p430_p6  ;;  %p437_p10 = por %p436_p4, %p435_p9 }
  0x29   : > { %p438_p12 = pnand %p437_p10, %p431_p11 }
  0x2b   : > { %441 = shalt.err (!%p438_p12)
}
  0x2c   : > { %348 = dma.hbm_to_vmem [thread:$0]  (!%p621_p0), %s615_s30, 128, %s617_s4, %s138_s6  }
  0x2d   : > { %p730_p1 = scmp.lt.s32.totalorder %s524_s14, 3  ;;  %p731_p2 = scmp.ge.s32.totalorder %s524_s14, 1 }
  0x2f   : > { %p156_p5 = pnand %p731_p2, %p730_p1 }
  0x30   : > { %s657_s28 = sand.u32 (!%p156_p5), 1, %s508_s10  }
  0x31   : > { %159 = sbr.rel (%p156_p5) target bundleno = 218 (0xda), region = 28  ;;  %s335_s29 = sshll.u32 (!%p156_p5), %s657_s28, 3 }
  0x32   : > { %s162_s3 = scalar_lea.sflag (!%p156_p5), [#allocation3], %s657_s28  ;;  %s165_s7 = scalar_lea.vmem (!%p156_p5), [#allocation2], %s335_s29 }
  0x38   : > { %495 = dma.done.wait (%p593_p8), %s162_s3, 128  }
  0x39   : > { %497 = vsyncadd (%p593_p8), %s162_s3, 4294967168  ;;  %v527_v0 = vmov 2   ;;  %v528_v1 = vmov 1   ;;  %v194_v2 = vld [vmem:[%s722_s1] sm:$0xff]  ;;  %v529_v3 = vmov 0   ;;  %s338_s21 = sshll.u32 %s516_s12, 7 }
  0x3a   : > { %406 = vset.pattern.permute.xlu0 %v527_v0  ;;  %408 = vset.pattern.permute.xlu1 %v528_v1  ;;  %v195_v4 = vld [vmem:[%s165_s7] sm:$0xff]  ;;  %s189_s5 = scalar_lea.vmem [#allocation5], %s335_s29  ;;  %s672_s16 = scalar_lea.hbm %s723_s2, %s338_s21 }
  0x3b   : > { %198 = vperm.xlu0 %406, %v194_v2   ;;  %209 = vperm.xlu1 %408, %v194_v2   ;;  %s230_s6 = sshll.u32 %s189_s5, 4  ;;  %s215_s18 = scalar_lea.sflag [#allocation4], %s657_s28  ;;  %s674_s6 = int_to_ptr.vmem [resolvable:$true] %s230_s6 }
  0x3c   : > { %s442_s19 = scalar_lea.vmem %s674_s6, 128  ;;  %p732_p9 = scmp.ne.s32.totalorder %s727_s22, 0 }
  0x3d   : > { %p443_p8 = scmp.ne.s32.totalorder %s674_s6, %s442_s19  ;;  %s530_s12 = smov [#allocation5]  }
  0x3e   : > { %s446_s20 = sshll.u32 %s530_s12, 4  ;;  %s447_s20 = int_to_ptr.vmem [resolvable:$false] %s446_s20 }
  0x3f   : > { %407 = vset.pattern.permute.xlu0 %v529_v3  ;;  %p444_p11 = pnand %p443_p8, %p732_p9  ;;  %s448_s25 = scalar_lea.vmem %s447_s20, 256 }
  0x40   : > { %204 = vperm.xlu0 %407, %v194_v2   ;;  %p449_p7 = scmp.lt.s32.totalorder %s674_s6, %s447_s20  ;;  %p450_p13 = scmp.lt.s32.totalorder %s448_s25, %s442_s19 }
  0x41   : > { %p445_p0 = pneg %p444_p11 }
  0x42   : > { %p451_p3 = por %p450_p13, %p449_p7 }
  0x44   : > { %409 = vset.pattern.permute.xlu0 %v528_v1  ;;  %p452_p6 = pnand %p451_p3, %p445_p0 }
  0xba   : > { %v199_v5 = vpop.permute.xlu0 %198  ;;  %v210_v9 = vpop.permute.xlu1 %209 }
  0xbb   : > { %v201_v6 = vmul.f32 %v199_v5, %v195_v4 }
  0xbd   : > { %410 = vtanh.f32 %v201_v6 }
  0xbf   : > { %v205_v7 = vpop.permute.xlu0 %204 }
  0xc7   : > { %v411_v8 = vpop.eup %410 }
  0xc8   : > { %v207_v10 = vmul.f32 %v411_v8, %v205_v7 }
  0xca   : > { %v212_v11 = vadd.f32 %v210_v9, %v207_v10 }
  0xcc   : > { %213 = vst [vmem:[%s189_s5] sm:$0xff] %v212_v11 }
  0xcd   : > { %455 = shalt.err (!%p452_p6)
}
  0xce   : > { %s456_s26 = scalar_lea.hbm %s672_s16, 128  ;;  %s460_s29 = scalar_lea.hbm %s723_s2, 256 }
  0xcf   : > { %p457_p4 = scmp.ne.s32.totalorder %s672_s16, %s456_s26  ;;  %p461_p1 = scmp.lt.u32.totalorder %s672_s16, %s723_s2 }
  0xd0   : > { %p462_p2 = scmp.lt.u32.totalorder %s460_s29, %s456_s26  ;;  %p464_p8 = scmp.lt.u32.totalorder %s456_s26, %s672_s16 }
  0xd1   : > { %p458_p10 = pnand %p457_p4, %p732_p9 }
  0xd2   : > { %p463_p5 = por %p462_p2, %p461_p1 }
  0xd3   : > { %p459_p12 = pneg %p458_p10 }
  0xd4   : > { %p465_p11 = por %p464_p8, %p463_p5 }
  0xd6   : > { %p466_p0 = pnand %p465_p11, %p459_p12 }
  0xd8   : > { %469 = shalt.err (!%p466_p0)
}
  0xd9   : > { %343 = dma.vmem_to_hbm [thread:$0]  (%p732_p9), %s674_s6, 128, %s672_s16, %s215_s18  }
  0xda PF: > { %s242_s30 = sand.u32 1, %s504_s9   ;;  %p733_p7 = scmp.ne.s32.totalorder %s728_s24, 0 }
  0xdb   : > { %p734_p13 = scmp.ge.s32.totalorder %s524_s14, 2  ;;  %s243_s4 = scalar_lea.sflag [#allocation4], %s242_s30 }
  0xdd   : > { %p350_p3 = pnand %p734_p13, %p733_p7 }
  0xdf   : > { %499 = dma.done.wait (!%p350_p3), %s243_s4, 128  }
  0xe0   : > { %501 = vsyncadd (!%p350_p3), %s243_s4, 4294967168  ;;  %s18_s14 = sadd.s32 1, %s524_s14   ;;  %s735_s9 = smov %s508_s10 }
  0xe1   : > { %p15_p6 = scmp.ge.s32.totalorder %s18_s14, 4   ;;  %s736_s10 = smov %s512_s11 }
  0xe2   : > { %s737_s11 = smov %s602_s23  ;;  %s738_s12 = smov %s520_s13 }
  0xe3   : > { %s739_s13 = smov %s741_s17  ;;  %17 = sbr.rel (!%p15_p6) target bundleno = 6 (0x6), region = 76 }
  0xea   :  { %248 = vsyncpa [#allocation3], 1 }
  0xeb   :  { %250 = vsyncpa [#allocation3 + $0x1], 1 }
  0xec   :  { %251 = vsyncpa [#allocation4], 1 }
  0xed   :  { %253 = vsyncpa [#allocation4 + $0x1], 1 }

</bundles_post_ra>
